<compile_context>
chip_gen: v6e
topology: v6e:2x2x1
jax: 0.10.0
libtpu: 0.0.40
codegen_flags: <defaults>
</compile_context>

<pallas_src>
import functools

import jax
import jax.numpy as jnp
import numpy as np
from jax.experimental import pallas as pl
from jax.experimental.pallas import tpu as pltpu


def _root_kernel(*refs, num_children, residual):
    """refs = (x_0..x_{k-1}, w_0..w_{k-1}, scale, bias, out).

    x_i   : (Ci, TILE_HW)   child block, channels on sublanes, spatial on lanes
    w_i   : (Cout, Ci)      per-child slice of the 1x1-conv weight
    scale : (Cout, 1)       folded BN scale (f32)
    bias  : (Cout, 1)       folded BN bias  (f32)
    out   : (Cout, TILE_HW)
    """
    xs = refs[:num_children]
    ws = refs[num_children:2 * num_children]
    s_ref = refs[2 * num_children]
    b_ref = refs[2 * num_children + 1]
    o_ref = refs[2 * num_children + 2]

    # conv1x1 over the (virtually) concatenated channels:
    #   W @ cat(x_i)  ==  sum_i  W_i @ x_i     (W split along Cin per child)
    acc = jnp.dot(ws[0][...], xs[0][...], preferred_element_type=jnp.float32)
    for i in range(1, num_children):
        acc = acc + jnp.dot(ws[i][...], xs[i][...],
                            preferred_element_type=jnp.float32)

    # folded BatchNorm: broadcast (Cout, 1) along lanes.
    y = acc * s_ref[...] + b_ref[...]

    if residual:
        # residual = children[0]; reuse the already-resident block (no 2nd DMA)
        y = y + xs[0][...].astype(jnp.float32)

    o_ref[...] = jnp.maximum(y, 0.0).astype(o_ref.dtype)


def _round_up(a, b):
    return ((a + b - 1) // b) * b


def root_forward(children_nchw, weight, scale, bias, *, residual=False,
                 tile_hw=512):
    """Root.forward.  `children_nchw` is a sequence of NCHW tensors.

    weight: (sum(Ci), Cout) 1x1-conv weight matrix (PyTorch (Cout,Cin,1,1)
            reshaped/transposed).  scale/bias: folded BN (Cout,).
    """
    children = list(children_nchw)
    num_children = len(children)
    N, _, H, W = children[0].shape
    child_c = [int(c.shape[1]) for c in children]
    cout = int(weight.shape[1])
    assert sum(child_c) == int(weight.shape[0]), "weight rows != total channels"
    if residual:
        assert child_c[0] == cout, "residual requires children[0].C == out_channels"

    dt = children[0].dtype
    HW = H * W

    # Pad spatial to a multiple of 128 lanes; tile = largest 128-multiple
    # <= tile_hw that divides the padded extent (keeps stores lane-dense,
    # pad waste <= 127 columns).
    HWp = _round_up(HW, 128)
    tile = 128
    for cand in range(max(tile_hw // 128, 1), 0, -1):
        t = cand * 128
        if HWp % t == 0:
            tile = t
            break

    xs = []
    for c in children:
        x = c.reshape(N, c.shape[1], HW)          # free reshape (NCHW contiguous)
        if HWp != HW:
            x = jnp.pad(x, ((0, 0), (0, 0), (0, HWp - HW)))
        xs.append(x)

    # Split the (Cin_total, Cout) weight per child; transpose to (Cout, Ci).
    offs = np.cumsum([0] + child_c)
    ws = [jnp.transpose(weight[int(offs[i]):int(offs[i + 1]), :]).astype(dt)
          for i in range(num_children)]
    s2d = jnp.asarray(scale, jnp.float32).reshape(cout, 1)
    b2d = jnp.asarray(bias, jnp.float32).reshape(cout, 1)

    in_specs = (
        [pl.BlockSpec((None, ci, tile), lambda n, s: (n, 0, s))
         for ci in child_c]
        + [pl.BlockSpec((cout, ci), lambda n, s: (0, 0)) for ci in child_c]
        + [pl.BlockSpec((cout, 1), lambda n, s: (0, 0)),
           pl.BlockSpec((cout, 1), lambda n, s: (0, 0))]
    )

    kernel = functools.partial(_root_kernel, num_children=num_children,
                               residual=residual)
    out = pl.pallas_call(
        kernel,
        out_shape=jax.ShapeDtypeStruct((N, cout, HWp), dt),
        grid_spec=pltpu.PrefetchScalarGridSpec(
            num_scalar_prefetch=0,
            grid=(N, HWp // tile),
            in_specs=in_specs,
            out_specs=pl.BlockSpec((None, cout, tile), lambda n, s: (n, 0, s)),
        ),
        compiler_params=pltpu.CompilerParams(
            dimension_semantics=("parallel", "parallel")),
    )(*xs, *ws, s2d, b2d)

    if HWp != HW:
        out = out[:, :, :HW]
    return out.reshape(N, cout, H, W)             # already NCHW


def init_params(key, child_channels, out_channels, dtype=jnp.float32, eps=1e-5):
    """Deterministic synthetic params; BN folded to scale/bias (eval mode)."""
    cin = int(sum(child_channels))
    kw, kg, kb, km, kv = jax.random.split(key, 5)
    weight = 0.2 * jax.random.normal(kw, (cin, out_channels), dtype)
    gamma = 1.0 + 0.1 * jax.random.normal(kg, (out_channels,), jnp.float32)
    beta = 0.1 * jax.random.normal(kb, (out_channels,), jnp.float32)
    mean = 0.1 * jax.random.normal(km, (out_channels,), jnp.float32)
    var = 0.5 + jax.random.uniform(kv, (out_channels,), jnp.float32)
    scale = gamma / jnp.sqrt(var + eps)
    bias = beta - mean * scale
    return weight, scale, bias


def reference_forward(children_nchw, weight, scale, bias, *, residual=False):
    """Pure-JAX reference for correctness checking."""
    x = jnp.concatenate(list(children_nchw), axis=1)        # NCHW concat
    x = jnp.transpose(x, (0, 2, 3, 1)).astype(jnp.float32)  # NHWC
    y = jnp.einsum('nhwc,co->nhwo', x, weight.astype(jnp.float32))
    y = y * scale.reshape(1, 1, 1, -1) + bias.reshape(1, 1, 1, -1)
    if residual:
        y = y + jnp.transpose(children_nchw[0], (0, 2, 3, 1)).astype(jnp.float32)
    y = jnp.maximum(y, 0.0)
    return jnp.transpose(y, (0, 3, 1, 2)).astype(children_nchw[0].dtype)


if __name__ == "__main__":
    key = jax.random.PRNGKey(0)
    k1, k2, kp = jax.random.split(key, 3)

    N, H, W = 2, 16, 16
    child_channels = (16, 16)          # two children concatenated -> Cin = 32
    out_channels = 16                  # == children[0] channels (residual add)

    x1 = jax.random.normal(k1, (N, child_channels[0], H, W), jnp.float32)
    x2 = jax.random.normal(k2, (N, child_channels[1], H, W), jnp.float32)
    weight, scale, bias = init_params(kp, child_channels, out_channels)

    out = root_forward((x1, x2), weight, scale, bias, residual=True, tile_hw=512)
    out = jax.block_until_ready(out)

    ref = reference_forward((x1, x2), weight, scale, bias, residual=True)
    assert out.shape == (N, out_channels, H, W)
    np.testing.assert_allclose(np.asarray(out), np.asarray(ref),
                               atol=1e-3, rtol=1e-3)
    print("KERNEL_OK")
</pallas_src>

<mosaic_0001>
module attributes {stable_mosaic.version = 11 : i64} {
  func.func @_root_kernel(%arg0: i32, %arg1: i32, %arg2: memref<1x16x256xf32, #tpu.memory_space<vmem>>, %arg3: memref<1x16x256xf32, #tpu.memory_space<vmem>>, %arg4: memref<16x16xf32, #tpu.memory_space<vmem>>, %arg5: memref<16x16xf32, #tpu.memory_space<vmem>>, %arg6: memref<16x1xf32, #tpu.memory_space<vmem>>, %arg7: memref<16x1xf32, #tpu.memory_space<vmem>>, %arg8: memref<1x16x256xf32, #tpu.memory_space<vmem>>) attributes {dimension_semantics = [#tpu.dimension_semantics<parallel>, #tpu.dimension_semantics<parallel>], iteration_bounds = array<i64: 2, 1>, scalar_prefetch = 0 : i64, scratch_operands = 0 : i64, tpu.core_type = #tpu.core_type<tc>, window_params = [{transform_indices = @transform_0, window_bounds = array<i64: 1, 16, 256>}, {transform_indices = @transform_1, window_bounds = array<i64: 1, 16, 256>}, {pipeline_mode = #tpu.pipeline_mode<synchronous>, transform_indices = @transform_2, window_bounds = array<i64: 16, 16>}, {pipeline_mode = #tpu.pipeline_mode<synchronous>, transform_indices = @transform_3, window_bounds = array<i64: 16, 16>}, {pipeline_mode = #tpu.pipeline_mode<synchronous>, transform_indices = @transform_4, window_bounds = array<i64: 16, 1>}, {pipeline_mode = #tpu.pipeline_mode<synchronous>, transform_indices = @transform_5, window_bounds = array<i64: 16, 1>}, {transform_indices = @transform_6, window_bounds = array<i64: 1, 16, 256>}]} {
    %c0 = arith.constant 0 : index
    %c0_0 = arith.constant 0 : index
    %0 = vector.load %arg4[%c0, %c0_0] : memref<16x16xf32, #tpu.memory_space<vmem>>, vector<16x16xf32>
    %c0_1 = arith.constant 0 : index
    %c0_2 = arith.constant 0 : index
    %c0_3 = arith.constant 0 : index
    %1 = vector.load %arg2[%c0_1, %c0_2, %c0_3] : memref<1x16x256xf32, #tpu.memory_space<vmem>>, vector<1x16x256xf32>
    %2 = vector.shape_cast %1 : vector<1x16x256xf32> to vector<16x256xf32>
    %cst = arith.constant dense<0.000000e+00> : vector<16x256xf32>
    %3 = tpu.matmul %0, %2, %cst {dimension_numbers = #tpu.dot_dimension_numbers<[1], [0], [0], [1], [0, 0, 1, 1], [], []>} : vector<16x16xf32>, vector<16x256xf32>, vector<16x256xf32> -> vector<16x256xf32>
    %c0_4 = arith.constant 0 : index
    %c0_5 = arith.constant 0 : index
    %4 = vector.load %arg5[%c0_4, %c0_5] : memref<16x16xf32, #tpu.memory_space<vmem>>, vector<16x16xf32>
    %c0_6 = arith.constant 0 : index
    %c0_7 = arith.constant 0 : index
    %c0_8 = arith.constant 0 : index
    %5 = vector.load %arg3[%c0_6, %c0_7, %c0_8] : memref<1x16x256xf32, #tpu.memory_space<vmem>>, vector<1x16x256xf32>
    %6 = vector.shape_cast %5 : vector<1x16x256xf32> to vector<16x256xf32>
    %cst_9 = arith.constant dense<0.000000e+00> : vector<16x256xf32>
    %7 = tpu.matmul %4, %6, %cst_9 {dimension_numbers = #tpu.dot_dimension_numbers<[1], [0], [0], [1], [0, 0, 1, 1], [], []>} : vector<16x16xf32>, vector<16x256xf32>, vector<16x256xf32> -> vector<16x256xf32>
    %8 = arith.addf %3, %7 : vector<16x256xf32>
    %c0_10 = arith.constant 0 : index
    %c0_11 = arith.constant 0 : index
    %9 = vector.load %arg6[%c0_10, %c0_11] : memref<16x1xf32, #tpu.memory_space<vmem>>, vector<16x1xf32>
    %10 = vector.broadcast %9 : vector<16x1xf32> to vector<16x256xf32>
    %11 = arith.mulf %8, %10 : vector<16x256xf32>
    %c0_12 = arith.constant 0 : index
    %c0_13 = arith.constant 0 : index
    %12 = vector.load %arg7[%c0_12, %c0_13] : memref<16x1xf32, #tpu.memory_space<vmem>>, vector<16x1xf32>
    %13 = vector.broadcast %12 : vector<16x1xf32> to vector<16x256xf32>
    %14 = arith.addf %11, %13 : vector<16x256xf32>
    %c0_14 = arith.constant 0 : index
    %c0_15 = arith.constant 0 : index
    %c0_16 = arith.constant 0 : index
    %15 = vector.load %arg2[%c0_14, %c0_15, %c0_16] : memref<1x16x256xf32, #tpu.memory_space<vmem>>, vector<1x16x256xf32>
    %16 = vector.shape_cast %15 : vector<1x16x256xf32> to vector<16x256xf32>
    %17 = arith.addf %14, %16 : vector<16x256xf32>
    %cst_17 = arith.constant 0.000000e+00 : f32
    %18 = vector.broadcast %cst_17 : f32 to vector<16x256xf32>
    %19 = arith.maximumf %17, %18 : vector<16x256xf32>
    %c0_18 = arith.constant 0 : index
    %c0_19 = arith.constant 0 : index
    %c0_20 = arith.constant 0 : index
    %20 = vector.load %arg8[%c0_18, %c0_19, %c0_20] : memref<1x16x256xf32, #tpu.memory_space<vmem>>, vector<1x16x256xf32>
    %21 = vector.shape_cast %20 : vector<1x16x256xf32> to vector<16x256xf32>
    %22 = vector.shape_cast %19 : vector<16x256xf32> to vector<1x16x256xf32>
    tpu.vector_store %arg8[%c0_18, %c0_19, %c0_20], %22 {strides = array<i32>} : memref<1x16x256xf32, #tpu.memory_space<vmem>>, vector<1x16x256xf32>,
    return
  }
  func.func @transform_0(%arg0: i32, %arg1: i32) -> (i32, i32, i32) {
    %c0_i32 = arith.constant 0 : i32
    %c0_i32_0 = arith.constant 0 : i32
    return %arg0, %c0_i32, %arg1 : i32, i32, i32
  }
  func.func @transform_1(%arg0: i32, %arg1: i32) -> (i32, i32, i32) {
    %c0_i32 = arith.constant 0 : i32
    %c0_i32_0 = arith.constant 0 : i32
    return %arg0, %c0_i32, %arg1 : i32, i32, i32
  }
  func.func @transform_2(%arg0: i32, %arg1: i32) -> (i32, i32) {
    %c0_i32 = arith.constant 0 : i32
    %c0_i32_0 = arith.constant 0 : i32
    %c0_i32_1 = arith.constant 0 : i32
    return %c0_i32, %c0_i32_0 : i32, i32
  }
  func.func @transform_3(%arg0: i32, %arg1: i32) -> (i32, i32) {
    %c0_i32 = arith.constant 0 : i32
    %c0_i32_0 = arith.constant 0 : i32
    %c0_i32_1 = arith.constant 0 : i32
    return %c0_i32, %c0_i32_0 : i32, i32
  }
  func.func @transform_4(%arg0: i32, %arg1: i32) -> (i32, i32) {
    %c0_i32 = arith.constant 0 : i32
    %c0_i32_0 = arith.constant 0 : i32
    %c0_i32_1 = arith.constant 0 : i32
    return %c0_i32, %c0_i32_0 : i32, i32
  }
  func.func @transform_5(%arg0: i32, %arg1: i32) -> (i32, i32) {
    %c0_i32 = arith.constant 0 : i32
    %c0_i32_0 = arith.constant 0 : i32
    %c0_i32_1 = arith.constant 0 : i32
    return %c0_i32, %c0_i32_0 : i32, i32
  }
  func.func @transform_6(%arg0: i32, %arg1: i32) -> (i32, i32, i32) {
    %c0_i32 = arith.constant 0 : i32
    %c0_i32_0 = arith.constant 0 : i32
    return %arg0, %c0_i32, %arg1 : i32, i32, i32
  }
}

</mosaic_0001>

<bundles_post_ra>
// kernel: tpu_custom_call.1
= control target key start
LH: loop header
LB: loop body
LE: loop exit
PB: predicated region body
PF: predicated region fallthrough
CT: control target
= control target key end

     0   :  { %s1192_s0 = inlined_call_operand.hbm [shape: f32[2,16,256], index: 0, kind: input, shape index: {}]   ;;  %s1193_s1 = inlined_call_operand.hbm [shape: f32[2,16,256], index: 1, kind: input, shape index: {}]   ;;  %s1194_s2 = inlined_call_operand.vmem [shape: f32[16,16], index: 2, kind: input, shape index: {}]   ;;  %s1195_s3 = inlined_call_operand.vmem [shape: f32[16,16], index: 3, kind: input, shape index: {}]   ;;  %s1196_s4 = inlined_call_operand.vmem [shape: f32[16,1], index: 4, kind: input, shape index: {}]   ;;  %s1197_s5 = inlined_call_operand.vmem [shape: f32[16,1], index: 5, kind: input, shape index: {}]   ;;  %s1198_s6 = inlined_call_operand.hbm [shape: f32[2,16,256], index: 6, kind: output, shape index: {}]  }
   0x1   :  { %1202 = sst [smem:[#allocation14_spill]] %s1192_s0 }
   0x2   :  { %11 = vsyncpa [#allocation3], 0 }
   0x3   :  { %13 = vsyncpa [#allocation3 + $0x1], 0 }
   0x4   :  { %14 = vsyncpa [#allocation6], 0 }
   0x5   :  { %16 = vsyncpa [#allocation6 + $0x1], 0 }
   0x6   :  { %17 = vsyncpa [#allocation4], 0 }
   0x7   :  { %19 = vsyncpa [#allocation4 + $0x1], 0  ;;  %s974_s21 = smov 0   ;;  %s976_s22 = smov 0  }
   0x8   :  { %s978_s23 = smov 0   ;;  %s980_s24 = smov 0  }
   0x9   :  { %s982_s25 = smov 0   ;;  %s984_s26 = smov 0  }
   0xa LB: > { %1203 = sst [smem:[#allocation11_spill]] %s916_s23  ;;  %s687_s27 = sadd.s32 4294967295, %s928_s26   ;;  %s928_s26 = sphi %s984_s26, %s25_s26   ;;  %s924_s25 = sphi %s982_s25, %s1220_s25   ;;  %s920_s24 = sphi %s980_s24, %s1219_s24   ;;  %s916_s23 = sphi %s978_s23, %s1215_s23   ;;  %s912_s22 = sphi %s976_s22, %s1218_s22   ;;  %s908_s21 = sphi %s974_s21, %s1217_s21  }
   0xb   : > { %s688_s28 = sadd.s32 4294967294, %s928_s26   ;;  %s37_s29 = sadd.s32 1, %s924_s25 }
   0xc   : > { %s46_s30 = sadd.s32 1, %s916_s23  ;;  %p39_p0 = scmp.ge.s32.totalorder %s37_s29, 2 }
   0xd   : > { %p53_p1 = scmp.ne.s32.totalorder %s916_s23, %s912_s22  ;;  %p54_p2 = scmp.eq.s32.totalorder %s928_s26, 0 }
   0xe   : > { %p59_p3 = scmp.ne.s32.totalorder %s912_s22, %s908_s21  ;;  %s1222_s29 = smov (%p39_p0, %s37_s29), 0 }
   0xf   : > { %1204 = sst [smem:[#allocation12_spill]] %s1222_s29  ;;  %p1015_p4 = por %p54_p2, %p53_p1 }
  0x10   : > { %p60_p5 = scmp.eq.s32.totalorder %s687_s27, 0  ;;  %s41_s8 = ssub.s32 %s924_s25, %s1222_s29 }
  0x11   : > { %p197_p6 = scmp.eq.s32.totalorder %s687_s27, 1  ;;  %p44_p7 = scmp.eq.s32.totalorder %s41_s8, 0 }
  0x12   : > { %p1021_p8 = por %p60_p5, %p59_p3  ;;  %p203_p10 = scmp.eq.s32.totalorder %s688_s28, 1 }
  0x13   : > { %p1025_p9 = por %p197_p6, %p53_p1  ;;  %p690_p12 = scmp.ge.s32.totalorder %s928_s26, 2 }
  0x14   : > { %s1030_s11 = scalar_select %p44_p7, %s916_s23, %s46_s30  }
  0x15   : > { %p1032_p11 = por %p203_p10, %p59_p3  ;;  %p730_p13 = scmp.lt.s32.totalorder %s928_s26, 2 }
  0x16   : > { %1208 = sst [smem:[#allocation13_spill]] %s1030_s11  ;;  %s1039_s13 = sand.u32 1, %s916_s23  }
  0x17   : > { %s1199_s14 = sshll.u32 %s1039_s13, 5  ;;  %s710_s15 = sshll.u32 %s924_s25, 9 }
  0x18   : > { %s1210_s0 = sld [smem:[#allocation14_spill]]  ;;  %s239_s19 = scalar_lea.vmem [#allocation2], %s1199_s14 }
  0x19   : > { %s248_s20 = sshll.u32 %s239_s19, 4  ;;  %p1052_p0 = pnand %p730_p13, %p1015_p4  ;;  %s249_s20 = int_to_ptr.vmem [resolvable:$true] %s248_s20 }
  0x1a   : > { %p697_p1 = scmp.ge.s32.totalorder %s928_s26, 1  ;;  %s236_s28 = scalar_lea.sflag [#allocation3], %s1039_s13 }
  0x1b   : > { %p790_p2 = pneg %p1052_p0  ;;  %s801_s30 = scalar_lea.vmem %s249_s20, 512 }
  0x1c   : > { %p802_p3 = scmp.ne.s32.totalorder %s249_s20, %s801_s30  ;;  %s930_s8 = smov [#allocation2]  }
  0x1d   : > { %s806_s16 = sshll.u32 %s930_s8, 4  ;;  %s807_s16 = int_to_ptr.vmem [resolvable:$false] %s806_s16 }
  0x1e   : > { %s247_s18 = scalar_lea.hbm %s1210_s0, %s710_s15  ;;  %p804_p5 = pnand %p802_p3, %p790_p2 }
  0x1f   : > { %s808_s7 = scalar_lea.vmem %s807_s16, 1024  ;;  %p809_p4 = scmp.lt.s32.totalorder %s249_s20, %s807_s16 }
  0x20   : > { %p805_p6 = pneg %p804_p5  ;;  %p810_p7 = scmp.lt.s32.totalorder %s808_s7, %s801_s30 }
  0x22   : > { %p811_p10 = por %p810_p7, %p809_p4 }
  0x24   : > { %p812_p13 = pnand %p811_p10, %p805_p6 }
  0x26   : > { %815 = shalt.err (!%p812_p13)
}
  0x27   : > { %s931_s17 = smov 256   ;;  %s932_s19 = smov 16  }
  0x28   : > { %722 = dma.hbm_to_vmem [thread:$0]  (!%p1052_p0), %s247_s18, 512, %s249_s20, %s236_s28, %s931_s17, %s931_s17, %s932_s19  }
  0x29   : > { %p279_p3 = scmp.lt.s32.totalorder %s928_s26, 3  ;;  %s270_s30 = scalar_lea.hbm %s1193_s1, %s710_s15 }
  0x2a   : > { %s1213_s7 = sshll.u32 %s1039_s13, 5  ;;  %s259_s11 = scalar_lea.sflag [#allocation6], %s1039_s13 }
  0x2b   : > { %p1073_p5 = pnand %p697_p1, %p279_p3  ;;  %s262_s0 = scalar_lea.vmem [#allocation5], %s1213_s7 }
  0x2c   : > { %s271_s29 = sshll.u32 %s262_s0, 4  ;;  %s933_s18 = smov [#allocation5]   ;;  %s272_s29 = int_to_ptr.vmem [resolvable:$true] %s271_s29 }
  0x2d   : > { %s829_s23 = scalar_lea.vmem %s272_s29, 512  ;;  %s834_s20 = sshll.u32 %s933_s18, 4  ;;  %s835_s20 = int_to_ptr.vmem [resolvable:$false] %s834_s20 }
  0x2e   : > { %p830_p6 = scmp.ne.s32.totalorder %s272_s29, %s829_s23  ;;  %s836_s14 = scalar_lea.vmem %s835_s20, 1024 }
  0x2f   : > { %p837_p10 = scmp.lt.s32.totalorder %s272_s29, %s835_s20  ;;  %p838_p1 = scmp.lt.s32.totalorder %s836_s14, %s829_s23 }
  0x30   : > { %p832_p4 = pnand %p830_p6, %p790_p2 }
  0x31   : > { %p839_p13 = por %p838_p1, %p837_p10 }
  0x32   : > { %p833_p7 = pneg %p832_p4 }
  0x34   : > { %p840_p3 = pnand %p839_p13, %p833_p7 }
  0x36   : > { %843 = shalt.err (!%p840_p3)
}
  0x37   : > { %725 = dma.hbm_to_vmem [thread:$0]  (!%p1052_p0), %s270_s30, 512, %s272_s29, %s259_s11, %s931_s17, %s931_s17, %s932_s19  }
  0x38   : > { %283 = sbr.rel (%p1073_p5) target bundleno = 294 (0x126), region = 44  ;;  %s1088_s0 = sand.u32 (!%p1073_p5), 1, %s912_s22  }
  0x39   : > { %s1091_s13 = sshll.u32 (!%p1073_p5), %s1088_s0, 5  ;;  %s286_s15 = scalar_lea.sflag (!%p1073_p5), [#allocation3], %s1088_s0 }
  0x3a   : > { %s289_s23 = scalar_lea.vmem (!%p1073_p5), [#allocation2], %s1091_s13 }
  0x3d   : > { %895 = dma.done.wait (%p1021_p8), %s286_s15, 512  }
  0x3e   : > { %897 = vsyncadd (%p1021_p8), %s286_s15, 4294966784  ;;  %s295_s29 = scalar_lea.sflag [#allocation6], %s1088_s0  ;;  %s298_s11 = scalar_lea.vmem [#allocation5], %s1091_s13 }
  0x3f   : > { %899 = dma.done.wait (%p1021_p8), %s295_s29, 512  }
  0x40   : > { %901 = vsyncadd (%p1021_p8), %s295_s29, 4294966784  ;;  %v934_v0 = vmov 0.0   ;;  %v935_v1 = vmov 0   ;;  %v346_v2 = vld [vmem:[%s298_s11 + $0x18] sm:$0xff]  ;;  %v345_v4 = vld [vmem:[%s298_s11 + $0x10] sm:$0xff]  ;;  %vm347_vm0 = vcmask 130048  }
  0x41   : > { %418 = vmatprep.mubr.f32.mxu0 %v934_v0  ;;  %501 = vmatprep.mubr.f32.mxu1 %v934_v0  ;;  %v1105_v3 = vld [vmem:[%s289_s23 + $0x18] sm:$0xff]  ;;  %v339_v5 = vld [vmem:[%s289_s23 + $0x10] sm:$0xff]  ;;  %v344_v6 = vld [vmem:[%s298_s11 + $0x8] sm:$0xff]  ;;  %s331_s9 = scalar_lea.vmem [#allocation7], %s1091_s13  ;;  %s712_s28 = sshll.u32 %s920_s24, 9 }
  0x42   : > { %786 = vset.pattern.permute.xlu0 %v935_v1  ;;  %787 = vset.pattern.permute.xlu1 %v935_v1  ;;  %v338_v7 = vld [vmem:[%s289_s23 + $0x8] sm:$0xff]  ;;  %v343_v8 = vld [vmem:[%s298_s11] sm:$0xff]  ;;  %s574_s27 = sshll.u32 %s331_s9, 4  ;;  %s1144_s13 = scalar_lea.hbm %s1198_s6, %s712_s28  ;;  %s1138_s27 = int_to_ptr.vmem [resolvable:$true] %s574_s27 }
  0x43   : > { %382 = vmatprep.subr.mxu0 %v346_v2  ;;  %465 = vmatprep.subr.mxu1 %v1105_v3  ;;  %v337_v9 = vld [vmem:[%s289_s23] sm:$0xff]  ;;  %v342_v14 = vld [vmem:[%s1195_s3 + $0x8] sm:$0xff]  ;;  %s559_s8 = scalar_lea.sflag [#allocation4], %s1088_s0  ;;  %s844_s30 = scalar_lea.vmem %s1138_s27, 512 }
  0x44   : > { %383 = vmatpush1.msra.mxu0 %v345_v4  ;;  %466 = vmatpush1.msra.mxu1 %v339_v5  ;;  %v341_v10 = vld [vmem:[%s1195_s3] sm:$0xff]  ;;  %v336_v15 = vld [vmem:[%s1194_s2 + $0x8] sm:$0xff]  ;;  %p845_p8 = scmp.ne.s32.totalorder %s1138_s27, %s844_s30  ;;  %s936_s24 = smov [#allocation7]  }
  0x45   : > { %384 = vmatprep.subr.mxu0 %v344_v6  ;;  %467 = vmatprep.subr.mxu1 %v338_v7  ;;  %v335_v11 = vld [vmem:[%s1194_s2] sm:$0xff]  ;;  %v515_v16 = vld [vmem:[%s1196_s4 + $0x8] sm:$0xff]  ;;  %s848_s16 = sshll.u32 %s936_s24, 4  ;;  %s849_s16 = int_to_ptr.vmem [resolvable:$false] %s848_s16 }
  0x46   : > { %385 = vmatpush1.msra.mxu0 %v343_v8  ;;  %468 = vmatpush1.msra.mxu1 %v337_v9  ;;  %v514_v12 = vld [vmem:[%s1196_s4] sm:$0xff]  ;;  %v531_v17 = vld [vmem:[%s1197_s5 + $0x8] sm:$0xff]  ;;  %p846_p0 = pnand %p845_p8, %p1025_p9  ;;  %s850_s7 = scalar_lea.vmem %s849_s16, 1024 }
  0x47   : > { %v530_v13 = vld [vmem:[%s1197_s5] sm:$0xff]  ;;  %701 = vmatmul.mubr.msk.f32.vlgmr.msra.gmra.mxu0 %vm347_vm0, %v341_v10  ;;  %703 = vmatmul.mubr.msk.f32.vlgmr.msra.gmra.mxu1 %vm347_vm0, %v335_v11  ;;  %p851_p5 = scmp.lt.s32.totalorder %s1138_s27, %s849_s16  ;;  %p852_p6 = scmp.lt.s32.totalorder %s850_s7, %s844_s30 }
  0x48   : > { %424 = vmatprep.mubr.f32.mxu0 %v934_v0  ;;  %507 = vmatprep.mubr.f32.mxu1 %v934_v0  ;;  %p847_p2 = pneg %p846_p0 }
  0x49   : > { %518 = vperm.xlu0 %786, %v514_v12   ;;  %534 = vperm.xlu1 %787, %v530_v13   ;;  %p853_p4 = por %p852_p6, %p851_p5 }
  0x4b   : > { %702 = vmatmul.mubr.msk.f32.gmra.mxu0 %vm347_vm0, %v342_v14  ;;  %704 = vmatmul.mubr.msk.f32.gmra.mxu1 %vm347_vm0, %v336_v15  ;;  %p854_p7 = pnand %p853_p4, %p847_p2 }
  0x4d   : > { %523 = vperm.xlu0 %786, %v515_v16   ;;  %539 = vperm.xlu1 %787, %v531_v17  }
  0xc4   : > { %v519_v18 = vpop.permute.xlu0 %518  ;;  %v535_v22 = vpop.permute.xlu1 %534 }
  0xc8   : > { %v524_v31 = vpop.permute.xlu0 %523  ;;  %v540_v39 = vpop.permute.xlu1 %539 }
 0x107   : > { %v420_v19 = vpop.f32.mrf.mxu0  ;;  %v503_v20 = vpop.f32.mrf.mxu1 }
 0x108   : > { %v504_v21 = vadd.f32 %v503_v20, %v420_v19 }
 0x109   : > { %v422_v23 = vpop.f32.mrf.mxu0  ;;  %v505_v24 = vpop.f32.mrf.mxu1 }
 0x10a   : > { %v526_v25 = vmul.f32 %v519_v18, %v504_v21  ;;  %v506_v26 = vadd.f32 %v505_v24, %v422_v23 }
 0x10b   : > { %v426_v27 = vpop.f32.mrf.mxu0  ;;  %v509_v28 = vpop.f32.mrf.mxu1 }
 0x10c   : > { %v542_v29 = vadd.f32 %v535_v22, %v526_v25  ;;  %v527_v30 = vmul.f32 %v519_v18, %v506_v26  ;;  %v510_v32 = vadd.f32 %v509_v28, %v426_v27 }
 0x10d   : > { %v428_v33 = vpop.f32.mrf.mxu0  ;;  %v511_v34 = vpop.f32.mrf.mxu1 }
 0x10e   : > { %v546_v35 = vadd.f32 %v542_v29, %v337_v9  ;;  %v543_v36 = vadd.f32 %v535_v22, %v527_v30  ;;  %v528_v37 = vmul.f32 %v524_v31, %v510_v32  ;;  %v512_v38 = vadd.f32 %v511_v34, %v428_v33 }
 0x110   : > { %v550_v40 = vmax.f32 %v546_v35, 0.0  ;;  %v547_v41 = vadd.f32 %v543_v36, %v338_v7  ;;  %v544_v42 = vadd.f32 %v540_v39, %v528_v37  ;;  %v529_v43 = vmul.f32 %v524_v31, %v512_v38 }
 0x112   : > { %554 = vst [vmem:[%s331_s9] sm:$0xff] %v550_v40  ;;  %v551_v44 = vmax.f32 %v547_v41, 0.0  ;;  %v548_v45 = vadd.f32 %v544_v42, %v339_v5  ;;  %v545_v46 = vadd.f32 %v540_v39, %v529_v43 }
 0x114   : > { %555 = vst [vmem:[%s331_s9 + $0x8] sm:$0xff] %v551_v44  ;;  %v552_v47 = vmax.f32 %v548_v45, 0.0  ;;  %v549_v48 = vadd.f32 %v545_v46, %v1105_v3 }
 0x116   : > { %556 = vst [vmem:[%s331_s9 + $0x10] sm:$0xff] %v552_v47  ;;  %v553_v49 = vmax.f32 %v549_v48, 0.0 }
 0x118   : > { %557 = vst [vmem:[%s331_s9 + $0x18] sm:$0xff] %v553_v49 }
 0x119   : > { %857 = shalt.err (!%p854_p7)
}
 0x11a   : > { %s858_s18 = scalar_lea.hbm %s1144_s13, 512  ;;  %s862_s15 = scalar_lea.hbm %s1198_s6, 1024 }
 0x11b   : > { %p859_p10 = scmp.ne.s32.totalorder %s1144_s13, %s858_s18  ;;  %p863_p3 = scmp.lt.s32.totalorder %s1144_s13, %s1198_s6 }
 0x11c   : > { %p864_p8 = scmp.lt.s32.totalorder %s862_s15, %s858_s18 }
 0x11d   : > { %p860_p1 = pnand %p859_p10, %p1025_p9 }
 0x11e   : > { %p865_p0 = por %p864_p8, %p863_p3 }
 0x11f   : > { %p861_p13 = pneg %p860_p1 }
 0x121   : > { %p866_p2 = pnand %p865_p0, %p861_p13 }
 0x123   : > { %869 = shalt.err (!%p866_p2)
}
 0x124   : > { %s937_s11 = smov 256   ;;  %s938_s9 = smov 16  }
 0x125   : > { %717 = dma.vmem_to_hbm [thread:$0]  (%p1025_p9), %s1138_s27, 512, %s1144_s13, %s559_s8, %s937_s11, %s937_s11, %s938_s9  }
 0x126 PF: > { %s589_s28 = sand.u32 1, %s908_s21   ;;  %p727_p5 = pnand %p690_p12, %p1032_p11 }
 0x127   : > { %s590_s17 = scalar_lea.sflag [#allocation4], %s589_s28 }
 0x128   : > { %p728_p6 = pneg %p727_p5 }
 0x12a   : > { %903 = dma.done.wait (%p728_p6), %s590_s17, 512  }
 0x12b   : > { %905 = vsyncadd (%p728_p6), %s590_s17, 4294966784  ;;  %s25_s26 = sadd.s32 1, %s928_s26   ;;  %s1214_s19 = sld [smem:[#allocation11_spill]] }
 0x12c   : > { %p22_p4 = scmp.ge.s32.totalorder %s25_s26, 4   ;;  %s1215_s23 = sld [smem:[#allocation13_spill]] }
 0x12d   : > { %s1216_s10 = sld [smem:[#allocation12_spill]]  ;;  %s1217_s21 = smov %s912_s22 }
 0x12e   : > { %s1219_s24 = smov %s924_s25 }
 0x12f   :  { %24 = sbr.rel (!%p22_p4) target bundleno = 10 (0xa), region = 102 }
 0x131   : > { %s1218_s22 = smov %s1214_s19 }
 0x133   : > { %s1220_s25 = smov %s1216_s10 }
 0x134   :  { %595 = vsyncpa [#allocation3], 1 }
 0x135   :  { %597 = vsyncpa [#allocation3 + $0x1], 1 }
 0x136   :  { %598 = vsyncpa [#allocation6], 1 }
 0x137   :  { %600 = vsyncpa [#allocation6 + $0x1], 1 }
 0x138   :  { %601 = vsyncpa [#allocation4], 1 }
 0x139   :  { %603 = vsyncpa [#allocation4 + $0x1], 1 }

</bundles_post_ra>
